<compile_context>
chip_gen: v7x
topology: tpu7x:2x2x1
jax: 0.10.0
libtpu: 0.0.40
codegen_flags: <defaults>
</compile_context>

<pallas_src>
import numpy as np
import jax
import jax.numpy as jnp
from jax.experimental import pallas as pl
from jax.experimental.pallas import tpu as pltpu


def sl_attention_kernel(view_ref, mask_ref, w_ref, b_ref, a_ref, rw_ref,
                        out_ref, m_ref, l_ref):
    v = pl.program_id(0)
    nv = pl.num_programs(0)

    view = view_ref[0]                                          # (N_p, H_p) f32
    # training-mode dropout: int8 keep mask; 1/(1-p) is folded into w
    x = view * mask_ref[0].astype(jnp.float32)
    # fc -> tanh on bf16 MXU operands, f32 accumulation
    h = jnp.tanh(
        jnp.dot(x.astype(jnp.bfloat16), w_ref[...],
                preferred_element_type=jnp.float32) + b_ref[...])   # (N_p, H_p)
    # masked row mean via pre-scaled row weights ((row < N) / N), then a . feat
    feat = jnp.sum(h * rw_ref[...], axis=0, keepdims=True)          # (1, H_p)
    s = jnp.sum(feat * a_ref[...], axis=-1, keepdims=True)          # (1, 1) score

    # ---- online softmax: accumulate exp(s_v - m) * view_v into the resident
    # ---- output block, rescaling previous contributions when m updates.
    @pl.when(v == 0)
    def _():
        m_ref[...] = s
        l_ref[...] = jnp.ones_like(s)
        out_ref[...] = view                       # weight exp(s - m) == 1

    @pl.when(v > 0)
    def _():
        m_old = m_ref[...]
        m_new = jnp.maximum(m_old, s)
        alpha = jnp.exp(m_old - m_new)            # rescale of prior accumulation
        p = jnp.exp(s - m_new)                    # this view's unnormalized weight
        l_ref[...] = alpha * l_ref[...] + p
        out_ref[...] = alpha * out_ref[...] + p * view
        m_ref[...] = m_new

    @pl.when(v == nv - 1)
    def _():
        out_ref[...] = out_ref[...] * pl.reciprocal(l_ref[...], approx=True)


def _round_up(x, m):
    return (x + m - 1) // m * m


def sl_attention_forward(views, w, b, a_vec, drop_keep=None, drop_p=0.0):
    """views: (V, N, H); w: (H, H) input-major (PyTorch fc.weight transposed);
    b: (H,); a_vec: (1, H) or (H,); drop_keep: optional (V, N, H) 0/1 keep mask
    (int8) for training-mode dropout with probability drop_p."""
    views = jnp.asarray(views, jnp.float32)
    V, N, H = views.shape

    # N padded to 32 so the int8 mask block is tile-aligned; H to 128 lanes.
    N_p = _round_up(max(N, 32), 32)
    H_p = _round_up(max(H, 128), 128)

    if drop_keep is None:
        drop_keep = jnp.ones((V, N, H), jnp.int8)
        drop_p = 0.0
    keep = jnp.asarray(drop_keep, jnp.int8)
    scale = 1.0 / (1.0 - float(drop_p)) if drop_p else 1.0

    pad3 = ((0, 0), (0, N_p - N), (0, H_p - H))
    views_p = jnp.pad(views, pad3)
    mask_p = jnp.pad(keep, pad3)
    # fold dropout scale into the fc weight; MXU operand in bf16
    w_p = jnp.pad(jnp.asarray(w, jnp.float32) * scale,
                  ((0, H_p - H), (0, H_p - H))).astype(jnp.bfloat16)
    b_p = jnp.pad(jnp.asarray(b, jnp.float32).reshape(1, H),
                  ((0, 0), (0, H_p - H)))
    a_p = jnp.pad(jnp.asarray(a_vec, jnp.float32).reshape(1, H),
                  ((0, 0), (0, H_p - H)))
    # row-weight column: (row < N) / N  -> masked mean with no in-kernel divide
    rw = jnp.zeros((N_p, 1), jnp.float32).at[:N, 0].set(1.0 / float(N))

    # --- VMEM budget: double-buffered streamed blocks + resident params/output
    per_step = (2 * N_p * H_p * 4      # f32 view blocks
                + 2 * N_p * H_p * 1    # int8 keep-mask blocks
                + 2 * H_p * H_p * 2    # bf16 fc weight
                + 2 * 2 * H_p * 4      # bias + a
                + 2 * N_p * 4          # row weights
                + 2 * N_p * H_p * 4)   # resident output block
    try:
        vmem_cap = int(pltpu.get_tpu_info().vmem_capacity_bytes)
    except Exception:
        vmem_cap = 64 << 20            # conservative (v7x per-core VMEM)
    budget = max(vmem_cap - (16 << 20), 16 << 20)
    vmem_limit = int(min(max(per_step + (2 << 20), 8 << 20), budget))

    out_p = pl.pallas_call(
        sl_attention_kernel,
        out_shape=jax.ShapeDtypeStruct((N_p, H_p), jnp.float32),
        grid=(V,),
        in_specs=[
            pl.BlockSpec((1, N_p, H_p), lambda v: (v, 0, 0)),   # views (one pass)
            pl.BlockSpec((1, N_p, H_p), lambda v: (v, 0, 0)),   # int8 keep mask
            pl.BlockSpec((H_p, H_p), lambda v: (0, 0)),         # fc weight (bf16)
            pl.BlockSpec((1, H_p), lambda v: (0, 0)),           # fc bias
            pl.BlockSpec((1, H_p), lambda v: (0, 0)),           # attention vector a
            pl.BlockSpec((N_p, 1), lambda v: (0, 0)),           # row weights
        ],
        out_specs=pl.BlockSpec((N_p, H_p), lambda v: (0, 0)),   # resident accumulator
        scratch_shapes=[pltpu.VMEM((1, 1), jnp.float32),        # running max m
                        pltpu.VMEM((1, 1), jnp.float32)],       # running denom l
        compiler_params=pltpu.CompilerParams(
            # the view axis carries the online-softmax recurrence
            dimension_semantics=("arbitrary",),
            vmem_limit_bytes=vmem_limit),
    )(views_p, mask_p, w_p, b_p, a_p, rw)

    return out_p[:N, :H]


def sl_attention_ref(views, w, b, a_vec, keep, drop_p):
    """Pure-JAX reference mirroring the PyTorch forward."""
    scale = 1.0 / (1.0 - drop_p) if drop_p else 1.0
    V = views.shape[0]
    scores = []
    for i in range(V):
        x = views[i] * keep[i].astype(jnp.float32) * scale
        h = jnp.tanh(jnp.dot(x, w, precision=jax.lax.Precision.HIGHEST) + b)
        scores.append(jnp.sum(a_vec.reshape(-1) * h.mean(axis=0)))
    beta = jax.nn.softmax(jnp.stack(scores))
    return sum(beta[i] * views[i] for i in range(V))


def init_params(key, hidden):
    """Match SLAttention.__init__: xavier_normal_(gain=1.414) on fc.weight and a."""
    kw, kb, ka = jax.random.split(key, 3)
    std_w = 1.414 * np.sqrt(2.0 / (hidden + hidden))
    w = std_w * jax.random.normal(kw, (hidden, hidden), dtype=jnp.float32)  # (in,out)
    bound = 1.0 / np.sqrt(hidden)                     # nn.Linear default bias init
    b = jax.random.uniform(kb, (hidden,), jnp.float32, -bound, bound)
    std_a = 1.414 * np.sqrt(2.0 / (hidden + 1))
    a_vec = std_a * jax.random.normal(ka, (1, hidden), dtype=jnp.float32)
    return w, b, a_vec


if __name__ == "__main__":
    V, N, H = 3, 50, 96          # 3 views of a 50-node graph, hidden = 96
    DROPOUT = 0.3

    root = jax.random.PRNGKey(0)
    k_param, k_views, k_drop = jax.random.split(root, 3)

    w, b, a_vec = init_params(k_param, H)
    views = jax.random.normal(k_views, (V, N, H), dtype=jnp.float32)

    # Training-mode dropout: host-generated 0/1 keep mask (int8, low HBM traffic).
    keep = jax.random.bernoulli(k_drop, 1.0 - DROPOUT, (V, N, H)).astype(jnp.int8)

    out = sl_attention_forward(views, w, b, a_vec, drop_keep=keep, drop_p=DROPOUT)
    out = jax.block_until_ready(out)

    ref = sl_attention_ref(views, w, b, a_vec, keep, DROPOUT)
    assert out.shape == (N, H) and out.dtype == jnp.float32
    err = float(jnp.max(jnp.abs(out - ref)))
    assert err < 5e-2, f"max abs err vs reference: {err}"
    print("KERNEL_OK")
</pallas_src>

<mosaic_0001>
module attributes {stable_mosaic.version = 11 : i64} {
  func.func @sl_attention_kernel(%arg0: i32, %arg1: memref<1x64x128xf32, #tpu.memory_space<vmem>>, %arg2: memref<1x64x128xi8, #tpu.memory_space<vmem>>, %arg3: memref<128x128xbf16, #tpu.memory_space<vmem>>, %arg4: memref<1x128xf32, #tpu.memory_space<vmem>>, %arg5: memref<1x128xf32, #tpu.memory_space<vmem>>, %arg6: memref<64x1xf32, #tpu.memory_space<vmem>>, %arg7: memref<64x128xf32, #tpu.memory_space<vmem>>, %arg8: memref<1x1xf32, #tpu.memory_space<vmem>>, %arg9: memref<1x1xf32, #tpu.memory_space<vmem>>) attributes {dimension_semantics = [#tpu.dimension_semantics<arbitrary>], iteration_bounds = array<i64: 3>, scalar_prefetch = 0 : i64, scratch_operands = 2 : i64, tpu.core_type = #tpu.core_type<tc>, window_params = [{transform_indices = @transform_0, window_bounds = array<i64: 1, 64, 128>}, {transform_indices = @transform_1, window_bounds = array<i64: 1, 64, 128>}, {pipeline_mode = #tpu.pipeline_mode<synchronous>, transform_indices = @transform_2, window_bounds = array<i64: 128, 128>}, {pipeline_mode = #tpu.pipeline_mode<synchronous>, transform_indices = @transform_3, window_bounds = array<i64: 1, 128>}, {pipeline_mode = #tpu.pipeline_mode<synchronous>, transform_indices = @transform_4, window_bounds = array<i64: 1, 128>}, {pipeline_mode = #tpu.pipeline_mode<synchronous>, transform_indices = @transform_5, window_bounds = array<i64: 64, 1>}, {pipeline_mode = #tpu.pipeline_mode<synchronous>, transform_indices = @transform_6, window_bounds = array<i64: 64, 128>}]} {
    %c0 = arith.constant 0 : index
    %c0_0 = arith.constant 0 : index
    %c0_1 = arith.constant 0 : index
    %0 = vector.load %arg1[%c0, %c0_0, %c0_1] : memref<1x64x128xf32, #tpu.memory_space<vmem>>, vector<1x64x128xf32>
    %1 = vector.shape_cast %0 : vector<1x64x128xf32> to vector<64x128xf32>
    %c0_2 = arith.constant 0 : index
    %c0_3 = arith.constant 0 : index
    %c0_4 = arith.constant 0 : index
    %2 = vector.load %arg2[%c0_2, %c0_3, %c0_4] : memref<1x64x128xi8, #tpu.memory_space<vmem>>, vector<1x64x128xi8>
    %3 = vector.shape_cast %2 : vector<1x64x128xi8> to vector<64x128xi8>
    %4 = arith.sitofp %3 : vector<64x128xi8> to vector<64x128xf32>
    %5 = arith.mulf %1, %4 : vector<64x128xf32>
    %6 = arith.truncf %5 : vector<64x128xf32> to vector<64x128xbf16>
    %c0_5 = arith.constant 0 : index
    %c0_6 = arith.constant 0 : index
    %7 = vector.load %arg3[%c0_5, %c0_6] : memref<128x128xbf16, #tpu.memory_space<vmem>>, vector<128x128xbf16>
    %cst = arith.constant dense<0.000000e+00> : vector<64x128xf32>
    %8 = tpu.matmul %6, %7, %cst {dimension_numbers = #tpu.dot_dimension_numbers<[1], [0], [0], [1], [0, 0, 1, 1], [], []>} : vector<64x128xbf16>, vector<128x128xbf16>, vector<64x128xf32> -> vector<64x128xf32>
    %c0_7 = arith.constant 0 : index
    %c0_8 = arith.constant 0 : index
    %9 = vector.load %arg4[%c0_7, %c0_8] : memref<1x128xf32, #tpu.memory_space<vmem>>, vector<1x128xf32>
    %10 = vector.broadcast %9 : vector<1x128xf32> to vector<64x128xf32>
    %11 = arith.addf %8, %10 : vector<64x128xf32>
    %12 = math.tanh %11 : vector<64x128xf32>
    %c0_9 = arith.constant 0 : index
    %c0_10 = arith.constant 0 : index
    %13 = vector.load %arg6[%c0_9, %c0_10] : memref<64x1xf32, #tpu.memory_space<vmem>>, vector<64x1xf32>
    %14 = vector.broadcast %13 : vector<64x1xf32> to vector<64x128xf32>
    %15 = arith.mulf %12, %14 : vector<64x128xf32>
    %cst_11 = arith.constant dense<0.000000e+00> : vector<128xf32>
    %16 = vector.multi_reduction <add>, %15, %cst_11 [0] : vector<64x128xf32> to vector<128xf32>
    %17 = vector.shape_cast %16 : vector<128xf32> to vector<1x128xf32>
    %c0_12 = arith.constant 0 : index
    %c0_13 = arith.constant 0 : index
    %18 = vector.load %arg5[%c0_12, %c0_13] : memref<1x128xf32, #tpu.memory_space<vmem>>, vector<1x128xf32>
    %19 = arith.mulf %17, %18 : vector<1x128xf32>
    %cst_14 = arith.constant dense<0.000000e+00> : vector<1xf32>
    %20 = vector.multi_reduction <add>, %19, %cst_14 [1] : vector<1x128xf32> to vector<1xf32>
    %21 = vector.shape_cast %20 : vector<1xf32> to vector<1x1xf32>
    %c0_i32 = arith.constant 0 : i32
    %22 = arith.cmpi eq, %arg0, %c0_i32 : i32
    %23 = arith.extui %22 : i1 to i32
    %c0_i32_15 = arith.constant 0 : i32
    %24 = arith.cmpi ne, %23, %c0_i32_15 : i32
    scf.if %24 {
      %c0_19 = arith.constant 0 : index
      %c0_20 = arith.constant 0 : index
      %31 = vector.load %arg8[%c0_19, %c0_20] : memref<1x1xf32, #tpu.memory_space<vmem>>, vector<1x1xf32>
      tpu.vector_store %arg8[%c0_19, %c0_20], %21 {strides = array<i32>} : memref<1x1xf32, #tpu.memory_space<vmem>>, vector<1x1xf32>,
      %cst_21 = arith.constant 1.000000e+00 : f32
      %32 = vector.broadcast %cst_21 : f32 to vector<1x1xf32>
      %c0_22 = arith.constant 0 : index
      %c0_23 = arith.constant 0 : index
      %33 = vector.load %arg9[%c0_22, %c0_23] : memref<1x1xf32, #tpu.memory_space<vmem>>, vector<1x1xf32>
      tpu.vector_store %arg9[%c0_22, %c0_23], %32 {strides = array<i32>} : memref<1x1xf32, #tpu.memory_space<vmem>>, vector<1x1xf32>,
      %c0_24 = arith.constant 0 : index
      %c0_25 = arith.constant 0 : index
      %34 = vector.load %arg7[%c0_24, %c0_25] : memref<64x128xf32, #tpu.memory_space<vmem>>, vector<64x128xf32>
      tpu.vector_store %arg7[%c0_24, %c0_25], %1 {strides = array<i32>} : memref<64x128xf32, #tpu.memory_space<vmem>>, vector<64x128xf32>,
    } else {
    }
    %c0_i32_16 = arith.constant 0 : i32
    %25 = arith.cmpi sgt, %arg0, %c0_i32_16 : i32
    %26 = arith.extui %25 : i1 to i32
    %c0_i32_17 = arith.constant 0 : i32
    %27 = arith.cmpi ne, %26, %c0_i32_17 : i32
    scf.if %27 {
      %c0_19 = arith.constant 0 : index
      %c0_20 = arith.constant 0 : index
      %31 = vector.load %arg8[%c0_19, %c0_20] : memref<1x1xf32, #tpu.memory_space<vmem>>, vector<1x1xf32>
      %32 = arith.maximumf %31, %21 : vector<1x1xf32>
      %33 = arith.subf %31, %32 : vector<1x1xf32>
      %34 = math.exp %33 : vector<1x1xf32>
      %35 = arith.subf %21, %32 : vector<1x1xf32>
      %36 = math.exp %35 : vector<1x1xf32>
      %c0_21 = arith.constant 0 : index
      %c0_22 = arith.constant 0 : index
      %37 = vector.load %arg9[%c0_21, %c0_22] : memref<1x1xf32, #tpu.memory_space<vmem>>, vector<1x1xf32>
      %38 = arith.mulf %34, %37 : vector<1x1xf32>
      %39 = arith.addf %38, %36 : vector<1x1xf32>
      %c0_23 = arith.constant 0 : index
      %c0_24 = arith.constant 0 : index
      %40 = vector.load %arg9[%c0_23, %c0_24] : memref<1x1xf32, #tpu.memory_space<vmem>>, vector<1x1xf32>
      tpu.vector_store %arg9[%c0_23, %c0_24], %39 {strides = array<i32>} : memref<1x1xf32, #tpu.memory_space<vmem>>, vector<1x1xf32>,
      %c0_25 = arith.constant 0 : index
      %c0_26 = arith.constant 0 : index
      %41 = vector.load %arg7[%c0_25, %c0_26] : memref<64x128xf32, #tpu.memory_space<vmem>>, vector<64x128xf32>
      %42 = vector.broadcast %34 : vector<1x1xf32> to vector<64x128xf32>
      %43 = arith.mulf %42, %41 : vector<64x128xf32>
      %44 = vector.broadcast %36 : vector<1x1xf32> to vector<64x128xf32>
      %45 = arith.mulf %44, %1 : vector<64x128xf32>
      %46 = arith.addf %43, %45 : vector<64x128xf32>
      %c0_27 = arith.constant 0 : index
      %c0_28 = arith.constant 0 : index
      %47 = vector.load %arg7[%c0_27, %c0_28] : memref<64x128xf32, #tpu.memory_space<vmem>>, vector<64x128xf32>
      tpu.vector_store %arg7[%c0_27, %c0_28], %46 {strides = array<i32>} : memref<64x128xf32, #tpu.memory_space<vmem>>, vector<64x128xf32>,
      %c0_29 = arith.constant 0 : index
      %c0_30 = arith.constant 0 : index
      %48 = vector.load %arg8[%c0_29, %c0_30] : memref<1x1xf32, #tpu.memory_space<vmem>>, vector<1x1xf32>
      tpu.vector_store %arg8[%c0_29, %c0_30], %32 {strides = array<i32>} : memref<1x1xf32, #tpu.memory_space<vmem>>, vector<1x1xf32>,
    } else {
    }
    %c2_i32 = arith.constant 2 : i32
    %28 = arith.cmpi eq, %arg0, %c2_i32 : i32
    %29 = arith.extui %28 : i1 to i32
    %c0_i32_18 = arith.constant 0 : i32
    %30 = arith.cmpi ne, %29, %c0_i32_18 : i32
    scf.if %30 {
      %c0_19 = arith.constant 0 : index
      %c0_20 = arith.constant 0 : index
      %31 = vector.load %arg7[%c0_19, %c0_20] : memref<64x128xf32, #tpu.memory_space<vmem>>, vector<64x128xf32>
      %c0_21 = arith.constant 0 : index
      %c0_22 = arith.constant 0 : index
      %32 = vector.load %arg9[%c0_21, %c0_22] : memref<1x1xf32, #tpu.memory_space<vmem>>, vector<1x1xf32>
      %33 = tpu.reciprocal %32 {approx = true} : vector<1x1xf32> -> vector<1x1xf32>
      %34 = vector.broadcast %33 : vector<1x1xf32> to vector<64x128xf32>
      %35 = arith.mulf %31, %34 : vector<64x128xf32>
      %c0_23 = arith.constant 0 : index
      %c0_24 = arith.constant 0 : index
      %36 = vector.load %arg7[%c0_23, %c0_24] : memref<64x128xf32, #tpu.memory_space<vmem>>, vector<64x128xf32>
      tpu.vector_store %arg7[%c0_23, %c0_24], %35 {strides = array<i32>} : memref<64x128xf32, #tpu.memory_space<vmem>>, vector<64x128xf32>,
    } else {
    }
    return
  }
  func.func @transform_0(%arg0: i32) -> (i32, i32, i32) {
    %c0_i32 = arith.constant 0 : i32
    %c0_i32_0 = arith.constant 0 : i32
    %c0_i32_1 = arith.constant 0 : i32
    return %arg0, %c0_i32, %c0_i32_0 : i32, i32, i32
  }
  func.func @transform_1(%arg0: i32) -> (i32, i32, i32) {
    %c0_i32 = arith.constant 0 : i32
    %c0_i32_0 = arith.constant 0 : i32
    %c0_i32_1 = arith.constant 0 : i32
    return %arg0, %c0_i32, %c0_i32_0 : i32, i32, i32
  }
  func.func @transform_2(%arg0: i32) -> (i32, i32) {
    %c0_i32 = arith.constant 0 : i32
    %c0_i32_0 = arith.constant 0 : i32
    %c0_i32_1 = arith.constant 0 : i32
    return %c0_i32, %c0_i32_0 : i32, i32
  }
  func.func @transform_3(%arg0: i32) -> (i32, i32) {
    %c0_i32 = arith.constant 0 : i32
    %c0_i32_0 = arith.constant 0 : i32
    %c0_i32_1 = arith.constant 0 : i32
    return %c0_i32, %c0_i32_0 : i32, i32
  }
  func.func @transform_4(%arg0: i32) -> (i32, i32) {
    %c0_i32 = arith.constant 0 : i32
    %c0_i32_0 = arith.constant 0 : i32
    %c0_i32_1 = arith.constant 0 : i32
    return %c0_i32, %c0_i32_0 : i32, i32
  }
  func.func @transform_5(%arg0: i32) -> (i32, i32) {
    %c0_i32 = arith.constant 0 : i32
    %c0_i32_0 = arith.constant 0 : i32
    %c0_i32_1 = arith.constant 0 : i32
    return %c0_i32, %c0_i32_0 : i32, i32
  }
  func.func @transform_6(%arg0: i32) -> (i32, i32) {
    %c0_i32 = arith.constant 0 : i32
    %c0_i32_0 = arith.constant 0 : i32
    %c0_i32_1 = arith.constant 0 : i32
    return %c0_i32, %c0_i32_0 : i32, i32
  }
}

</mosaic_0001>

<bundles_post_ra>
// kernel: tpu_custom_call.1
= control target key start
LH: loop header
LB: loop body
LE: loop exit
PB: predicated region body
PF: predicated region fallthrough
CT: control target
= control target key end

     0   :  { %11 = vsyncpa [#allocation5], 0  ;;  %s1405_s0 = inlined_call_operand.hbm [shape: f32[3,64,128], index: 0, kind: input, shape index: {}]   ;;  %s1406_s1 = inlined_call_operand.hbm [shape: s8[3,64,128], index: 1, kind: input, shape index: {}]   ;;  %s1407_s2 = inlined_call_operand.vmem [shape: bf16[128,128], index: 2, kind: input, shape index: {}]   ;;  %s1408_s3 = inlined_call_operand.vmem [shape: f32[1,128], index: 3, kind: input, shape index: {}]   ;;  %s1409_s4 = inlined_call_operand.vmem [shape: f32[1,128], index: 4, kind: input, shape index: {}]   ;;  %s1410_s5 = inlined_call_operand.vmem [shape: f32[64,1], index: 5, kind: input, shape index: {}]   ;;  %s1411_s6 = inlined_call_operand.hbm [shape: f32[64,128], index: 6, kind: output, shape index: {}]  }
   0x1   :  { %13 = vsyncpa [#allocation5 + $0x1], 0 }
   0x2   :  { %14 = vsyncpa [#allocation8], 0 }
   0x3   :  { %16 = vsyncpa [#allocation8 + $0x1], 0 }
   0x4   :  { %17 = vsyncpa [#allocation6], 0  ;;  %s1116_s21 = smov 0   ;;  %s1118_s22 = smov 0  }
   0x5   :  { %s1120_s23 = smov 0   ;;  %s1122_s24 = smov 0  }
   0x6 LB: > { %s1135_s25 = sadd.s32 4294967295, %s1068_s24   ;;  %s1138_s26 = sadd.s32 1, %s1068_s24   ;;  %s1068_s24 = sphi %s1122_s24, %s1421_s24   ;;  %s1064_s23 = sphi %s1120_s23, %s1420_s23   ;;  %s1060_s22 = sphi %s1118_s22, %s1419_s22   ;;  %s1056_s21 = sphi %s1116_s21, %s1418_s21  }
   0x7   : > { %s27_s27 = ssub.s32 %s1068_s24, %s1138_s26  ;;  %s30_s28 = sadd.s32 1, %s1064_s23 }
   0x8   : > { %p28_p0 = scmp.eq.s32.totalorder %s27_s27, 0  ;;  %p37_p1 = scmp.ne.s32.totalorder %s1064_s23, %s1060_s22 }
   0x9   : > { %p38_p2 = scmp.eq.s32.totalorder %s1068_s24, 0  ;;  %p43_p3 = scmp.ne.s32.totalorder %s1060_s22, %s1056_s21 }
   0xa   : > { %s1148_s29 = scalar_select %p28_p0, %s1064_s23, %s30_s28  }
   0xb   : > { %p39_p4 = por %p38_p2, %p37_p1  ;;  %p44_p5 = scmp.eq.s32.totalorder %s1135_s25, 0 }
   0xc   : > { %p862_p6 = scmp.lt.s32.totalorder %s1068_s24, 3  ;;  %s1157_s7 = sand.u32 1, %s1064_s23  }
   0xd   : > { %p1152_p7 = por %p44_p5, %p43_p3  ;;  %s766_s8 = sshll.u32 %s1157_s7, 6 }
   0xe   : > { %s791_s9 = sshll.u32 %s1068_s24, 10  ;;  %s214_s13 = scalar_lea.vmem [#allocation4], %s766_s8 }
   0xf   : > { %s1413_s30 = scalar_select %p1152_p7, 1, 0 }
  0x10   : > { %s1164_s12 = scalar_lea.hbm %s1405_s0, %s791_s9  ;;  %s221_s14 = sshll.u32 %s214_s13, 4  ;;  %s1166_s14 = int_to_ptr.vmem [resolvable:$true] %s221_s14 }
  0x11   : > { %p1168_p8 = pnand %p862_p6, %p39_p4  ;;  %s211_s16 = scalar_lea.sflag [#allocation5], %s1157_s7 }
  0x12   : > { %s940_s17 = scalar_lea.hbm %s1164_s12, 1024  ;;  %s945_s20 = scalar_lea.hbm %s1405_s0, 3072 }
  0x13   : > { %p941_p10 = scmp.ne.s32.totalorder %s1164_s12, %s940_s17  ;;  %p942_p11 = pneg %p1168_p8 }
  0x14   : > { %p946_p0 = scmp.lt.u32.totalorder %s1164_s12, %s1405_s0  ;;  %p947_p1 = scmp.lt.u32.totalorder %s945_s20, %s940_s17 }
  0x15   : > { %p943_p12 = pnand %p942_p11, %p941_p10  ;;  %p949_p3 = scmp.lt.u32.totalorder %s940_s17, %s1164_s12 }
  0x16   : > { %p948_p2 = por %p947_p1, %p946_p0 }
  0x17   : > { %p944_p13 = pneg %p943_p12 }
  0x18   : > { %p950_p4 = por %p949_p3, %p948_p2 }
  0x1a   : > { %p951_p5 = pnand %p950_p4, %p944_p13 }
  0x1c   : > { %954 = shalt.err (!%p951_p5)
}
  0x1d   : > { %s955_s28 = scalar_lea.vmem %s1166_s14, 1024  ;;  %s1070_s8 = smov [#allocation4]  }
  0x1e   : > { %p956_p6 = scmp.ne.s32.totalorder %s1166_s14, %s955_s28  ;;  %s960_s9 = sshll.u32 %s1070_s8, 4  ;;  %s961_s9 = int_to_ptr.vmem [resolvable:$false] %s960_s9 }
  0x1f   : > { %s962_s10 = scalar_lea.vmem %s961_s9, 2048  ;;  %p963_p9 = scmp.lt.s32.totalorder %s1166_s14, %s961_s9 }
  0x20   : > { %p958_p10 = pnand %p956_p6, %p942_p11  ;;  %p964_p0 = scmp.lt.s32.totalorder %s962_s10, %s955_s28 }
  0x22   : > { %p959_p12 = pneg %p958_p10  ;;  %p965_p1 = por %p964_p0, %p963_p9 }
  0x24   : > { %p966_p2 = pnand %p965_p1, %p959_p12 }
  0x26   : > { %969 = shalt.err (!%p966_p2)
}
  0x27   : > { %s1071_s11 = smov 128   ;;  %s1072_s13 = smov 8  }
  0x28   : > { %858 = dma.hbm_to_vmem [thread:$0]  (!%p1168_p8), %s1164_s12, 1024, %s1166_s14, %s211_s16, %s1071_s11, %s1071_s11, %s1072_s13  }
  0x29   : > { %p250_p9 = scmp.lt.s32.totalorder %s1068_s24, 4  ;;  %s769_s17 = sshll.u32 %s1157_s7, 4 }
  0x2a   : > { %s792_s18 = sshll.u32 %s1068_s24, 8  ;;  %p1415_p13 = scmp.ge.s32.totalorder %s1068_s24, 1 }
  0x2b   : > { %s1216_s27 = scalar_lea.hbm %s1406_s1, %s792_s18  ;;  %s235_s28 = scalar_lea.vmem [#allocation7], %s769_s17 }
  0x2c   : > { %p1209_p3 = pnand %p1415_p13, %p250_p9  ;;  %s242_s8 = sshll.u32 %s235_s28, 4  ;;  %s1218_s8 = int_to_ptr.vmem [resolvable:$true] %s242_s8 }
  0x2d   : > { %s232_s12 = scalar_lea.sflag [#allocation8], %s1157_s7  ;;  %s970_s14 = scalar_lea.hbm %s1216_s27, 256 }
  0x2e   : > { %p971_p4 = scmp.ne.s32.totalorder %s1216_s27, %s970_s14  ;;  %s975_s9 = scalar_lea.hbm %s1406_s1, 768 }
  0x2f   : > { %p976_p10 = scmp.lt.u32.totalorder %s1216_s27, %s1406_s1  ;;  %p977_p12 = scmp.lt.u32.totalorder %s975_s9, %s970_s14 }
  0x30   : > { %p973_p5 = pnand %p971_p4, %p942_p11  ;;  %p979_p1 = scmp.lt.u32.totalorder %s970_s14, %s1216_s27 }
  0x31   : > { %p978_p0 = por %p977_p12, %p976_p10 }
  0x32   : > { %p974_p6 = pneg %p973_p5 }
  0x33   : > { %p980_p2 = por %p979_p1, %p978_p0 }
  0x35   : > { %p981_p9 = pnand %p980_p2, %p974_p6 }
  0x37   : > { %984 = shalt.err (!%p981_p9)
}
  0x38   : > { %s985_s17 = scalar_lea.vmem %s1218_s8, 256  ;;  %s1073_s20 = smov [#allocation7]  }
  0x39   : > { %p986_p13 = scmp.ne.s32.totalorder %s1218_s8, %s985_s17  ;;  %s990_s21 = sshll.u32 %s1073_s20, 4  ;;  %s991_s21 = int_to_ptr.vmem [resolvable:$false] %s990_s21 }
  0x3a   : > { %s992_s28 = scalar_lea.vmem %s991_s21, 512  ;;  %p993_p7 = scmp.lt.s32.totalorder %s1218_s8, %s991_s21 }
  0x3b   : > { %p988_p4 = pnand %p986_p13, %p942_p11  ;;  %p994_p10 = scmp.lt.s32.totalorder %s992_s28, %s985_s17 }
  0x3d   : > { %p989_p5 = pneg %p988_p4  ;;  %p995_p12 = por %p994_p10, %p993_p7 }
  0x3f   : > { %p996_p0 = pnand %p995_p12, %p989_p5 }
  0x41   : > { %999 = shalt.err (!%p996_p0)
}
  0x42   : > { %861 = dma.hbm_to_vmem [thread:$0]  (!%p1168_p8), %s1216_s27, 256, %s1218_s8, %s232_s12, %s1071_s11, %s1071_s11, %s1072_s13  }
  0x43   : > { %254 = sbr.rel (%p1209_p3) target bundleno = 851 (0x353), region = 44  ;;  %s256_s14 = sand.u32 (!%p1209_p3), 1, %s1060_s22  }
  0x44   : > { %s773_s24 = sshll.u32 (!%p1209_p3), %s256_s14, 6  ;;  %s257_s16 = scalar_lea.sflag (!%p1209_p3), [#allocation5], %s256_s14 }
  0x45   : > { %s1252_s9 = scalar_lea.vmem (!%p1209_p3), [#allocation4], %s773_s24  ;;  %p1417_p7 = scmp.ne.s32.totalorder (!%p1209_p3), %s1413_s30, 0 }
  0x4a   : > { %1043 = dma.done.wait (%p1417_p7), %s257_s16, 1024  }
  0x4b   : > { %1045 = vsyncadd (%p1417_p7), %s257_s16, 4294966272  ;;  %s774_s7 = sshll.u32 %s256_s14, 4  ;;  %s266_s15 = scalar_lea.sflag [#allocation8], %s256_s14 }
  0x4c   : > { %s269_s10 = scalar_lea.vmem [#allocation7], %s774_s7 }
  0x4d   : > { %1047 = dma.done.wait (%p1417_p7), %s266_s15, 256  }
  0x4e   : > { %1049 = vsyncadd (%p1417_p7), %s266_s15, 4294967040  ;;  %v1074_v0 = vmov 0   ;;  %v908_v1 = vld [vmem:[%s1407_s2] sm:$0xff]   ;;  %v909_v2 = vld [vmem:[%s1407_s2 + $0x8] sm:$0xff]   ;;  %vm552_vm0 = vcmask 1040384   ;;  %p784_p8 = scmp.ne.s32.totalorder %s1135_s25, 0 }
  0x4f   : > { %906 = vset.pattern.permute.xlu0 %v1074_v0  ;;  %907 = vset.pattern.permute.xlu1 %v1074_v0  ;;  %v910_v3 = vld [vmem:[%s1407_s2 + $0x10] sm:$0xff]   ;;  %v911_v4 = vld [vmem:[%s1407_s2 + $0x18] sm:$0xff]   ;;  %v1275_v9 = vld [vmem:[%s1252_s9] sm:$0xff]  ;;  %vm560_vm1 = vcmask (!%p784_p8), 0  }
  0x50   : > { %805 = vmatprep.subr.bf16.mxu0 %v908_v1  ;;  %829 = vmatprep.subr.bf16.mxu1 %v908_v1  ;;  %v307_v5 = vld [vmem:[%s269_s10] sm:$0xff]  ;;  %v308_v8 = vld [vmem:[%s269_s10 + $0x8] sm:$0xff]  ;;  %563 = vst [vmem:[#allocation9] sm:$0xff] (!%p784_p8), %v1275_v9 }
  0x51   : > { %806 = vmatpush3.bf16.msra.mxu0 %v908_v1  ;;  %837 = vmatpush3.bf16.msra.mxu1 %v908_v1  ;;  %v309_v6 = vunpack.c.0.s8 %v307_v5  ;;  %v310_v7 = vunpack.c.1.s8 %v307_v5  ;;  %v1278_v10 = vld [vmem:[%s1252_s9 + $0x8] sm:$0xff]  ;;  %v1281_v11 = vld [vmem:[%s1252_s9 + $0x20] sm:$0xff]  ;;  %v313_v12 = vunpack.c.0.s8 %v308_v8  ;;  %v314_v13 = vunpack.c.1.s8 %v308_v8  ;;  %v484_v28 = vld [vmem:[%s1410_s5 + $0x18] sm:$0xff] }
  0x52   : > { %807 = vmatprep.subr.bf16.mxu0 %v909_v2  ;;  %830 = vmatprep.subr.bf16.mxu1 %v909_v2  ;;  %v1284_v16 = vld [vmem:[%s1252_s9 + $0x28] sm:$0xff]  ;;  %v481_v17 = vld [vmem:[%s1410_s5] sm:$0xff]  ;;  %v311_v31 = vunpack.c.2.s8 %v307_v5  ;;  %v312_v32 = vunpack.c.3.s8 %v307_v5  ;;  %v315_v33 = vunpack.c.2.s8 %v308_v8  ;;  %v316_v34 = vunpack.c.3.s8 %v308_v8  ;;  %v1318_v38 = vld [vmem:[%s1252_s9 + $0x10] sm:$0xff]  ;;  %564 = vst [vmem:[#allocation9 + $0x8] sm:$0xff] (!%p784_p8), %v1278_v10 }
  0x53   : > { %v317_v14 = vcvt.s32.f32 %v309_v6  ;;  %v318_v15 = vcvt.s32.f32 %v310_v7  ;;  %v483_v18 = vld [vmem:[%s1410_s5 + $0x10] sm:$0xff]  ;;  %v912_v19 = vld [vmem:[%s1407_s2 + $0x20] sm:$0xff]   ;;  %v321_v20 = vcvt.s32.f32 %v313_v12  ;;  %v322_v21 = vcvt.s32.f32 %v314_v13  ;;  %491 = vperm.xlu0 %906, %v481_v17   ;;  %v482_v26 = vld [vmem:[%s1410_s5 + $0x8] sm:$0xff]  ;;  %565 = vst [vmem:[#allocation9 + $0x10] sm:$0xff] (!%p784_p8), %v1318_v38 }
  0x54   : > { %501 = vperm.xlu1 %907, %v483_v18   ;;  %v913_v29 = vld [vmem:[%s1407_s2 + $0x28] sm:$0xff]   ;;  %v485_v35 = vld [vmem:[%s1410_s5 + $0x20] sm:$0xff]  ;;  %v914_v37 = vld [vmem:[%s1407_s2 + $0x30] sm:$0xff]   ;;  %v319_v40 = vcvt.s32.f32 %v311_v31  ;;  %v320_v41 = vcvt.s32.f32 %v312_v32  ;;  %v323_v42 = vcvt.s32.f32 %v315_v33  ;;  %v324_v43 = vcvt.s32.f32 %v316_v34  ;;  %567 = vst [vmem:[#allocation9 + $0x20] sm:$0xff] (!%p784_p8), %v1281_v11 }
  0x55   : > { %808 = vmatpush3.bf16.msra.mxu0 %v909_v2  ;;  %838 = vmatpush3.bf16.msra.mxu1 %v909_v2  ;;  %v325_v22 = vmul.f32 %v317_v14, %v1275_v9  ;;  %v326_v23 = vmul.f32 %v318_v15, %v1278_v10  ;;  %v329_v24 = vmul.f32 %v321_v20, %v1281_v11  ;;  %v486_v36 = vld [vmem:[%s1410_s5 + $0x28] sm:$0xff]  ;;  %v1321_v39 = vld [vmem:[%s1252_s9 + $0x18] sm:$0xff]  ;;  %v487_v44 = vld [vmem:[%s1410_s5 + $0x30] sm:$0xff] }
  0x56   : > { %809 = vmatprep.subr.bf16.mxu0 %v910_v3  ;;  %831 = vmatprep.subr.bf16.mxu1 %v910_v3  ;;  %v330_v25 = vmul.f32 %v322_v21, %v1284_v16  ;;  %v1327_v45 = vld [vmem:[%s1252_s9 + $0x30] sm:$0xff]  ;;  %v1330_v46 = vld [vmem:[%s1252_s9 + $0x38] sm:$0xff]  ;;  %v327_v49 = vmul.f32 %v319_v40, %v1318_v38  ;;  %v328_v50 = vmul.f32 %v320_v41, %v1321_v39 }
  0x57   : > { %v333_v27 = vpack.c.bf16 %v326_v23, %v325_v22  ;;  %496 = vperm.xlu0 %906, %v482_v26   ;;  %v488_v47 = vld [vmem:[%s1410_s5 + $0x38] sm:$0xff]  ;;  %v331_v51 = vmul.f32 %v323_v42, %v1327_v45  ;;  %v332_v52 = vmul.f32 %v324_v43, %v1330_v46  ;;  %v775_v56 = vld [vmem:[%s1408_s3] ss:$0 sm:$0xff]  ;;  %566 = vst [vmem:[#allocation9 + $0x18] sm:$0xff] (!%p784_p8), %v1321_v39  ;;  %568 = vst [vmem:[#allocation9 + $0x28] sm:$0xff] (!%p784_p8), %v1284_v16 }
  0x58   : > { %v335_v30 = vpack.c.bf16 %v330_v25, %v329_v24  ;;  %506 = vperm.xlu1 %907, %v484_v28   ;;  %v915_v48 = vld [vmem:[%s1407_s2 + $0x38] sm:$0xff]   ;;  %v334_v53 = vpack.c.bf16 %v328_v50, %v327_v49  ;;  %569 = vst [vmem:[#allocation9 + $0x30] sm:$0xff] (!%p784_p8), %v1327_v45  ;;  %570 = vst [vmem:[#allocation9 + $0x38] sm:$0xff] (!%p784_p8), %v1330_v46 }
  0x59   : > { %810 = vmatpush3.bf16.msra.mxu0 %v910_v3  ;;  %839 = vmatpush3.bf16.msra.mxu1 %v910_v3  ;;  %v336_v54 = vpack.c.bf16 %v332_v52, %v331_v51  ;;  %v550_v52 = vld [vmem:[%s1409_s4] sm:$0x1] }
  0x5a   : > { %811 = vmatprep.subr.bf16.mxu0 %v911_v4  ;;  %832 = vmatprep.subr.bf16.mxu1 %v911_v4 }
  0x5b   : > { %821 = vmatprep.mubr.bf16.mxu0 %v333_v27  ;;  %825 = vmatprep.mubr.bf16.mxu1 %v335_v30 }
  0x5c   : > { %511 = vperm.xlu0 %906, %v485_v35   ;;  %516 = vperm.xlu1 %907, %v486_v36  }
  0x5d   : > { %812 = vmatpush3.bf16.msra.mxu0 %v911_v4  ;;  %840 = vmatpush3.bf16.msra.mxu1 %v911_v4 }
  0x5e   : > { %813 = vmatprep.subr.bf16.mxu0 %v912_v19  ;;  %833 = vmatprep.subr.bf16.mxu1 %v912_v19 }
  0x60   : > { %521 = vperm.xlu0 %906, %v487_v44   ;;  %526 = vperm.xlu1 %907, %v488_v47  }
  0x61   : > { %814 = vmatpush3.bf16.msra.mxu0 %v912_v19  ;;  %841 = vmatpush3.bf16.msra.mxu1 %v912_v19 }
  0x62   : > { %815 = vmatprep.subr.bf16.mxu0 %v913_v29  ;;  %834 = vmatprep.subr.bf16.mxu1 %v913_v29 }
  0x65   : > { %816 = vmatpush3.bf16.msra.mxu0 %v913_v29  ;;  %842 = vmatpush3.bf16.msra.mxu1 %v913_v29 }
  0x66   : > { %817 = vmatprep.subr.bf16.mxu0 %v914_v37  ;;  %835 = vmatprep.subr.bf16.mxu1 %v914_v37 }
  0x69   : > { %818 = vmatpush3.bf16.msra.mxu0 %v914_v37  ;;  %843 = vmatpush3.bf16.msra.mxu1 %v914_v37 }
  0x6a   : > { %819 = vmatprep.subr.bf16.mxu0 %v915_v48  ;;  %836 = vmatprep.subr.bf16.mxu1 %v915_v48 }
  0x6d   : > { %820 = vmatpush3.bf16.msra.mxu0 %v915_v48  ;;  %844 = vmatpush3.bf16.msra.mxu1 %v915_v48 }
  0x70   : > { %822 = vmatmul.mubr.bf16.vlgmr.msra.gmra.mrb[0].mxu0 %v334_v53  ;;  %826 = vmatmul.mubr.bf16.vlgmr.msra.gmra.mrb[0].mxu1 %v336_v54 }
  0xd2   : > { %v492_v4 = vpop.permute.xlu0 %491 }
  0xd3   : > { %v502_v7 = vpop.permute.xlu1 %501 }
  0xd6   : > { %v497_v13 = vpop.permute.xlu0 %496 }
  0xd7   : > { %v507_v15 = vpop.permute.xlu1 %506 }
  0xdb   : > { %v512_v22 = vpop.permute.xlu0 %511  ;;  %v517_v26 = vpop.permute.xlu1 %516 }
  0xdf   : > { %v522_v33 = vpop.permute.xlu0 %521  ;;  %v527_v37 = vpop.permute.xlu1 %526 }
 0x143   : > { %v823_v55 = vpop.f32.mrb[0].mxu0  ;;  %v827_v57 = vpop.f32.mrb[0].mxu1 }
 0x144   : > { %v442_v58 = vpop.f32.mrb[1].mxu0  ;;  %v458_v59 = vpop.f32.mrb[1].mxu1  ;;  %v451_v1 = vadd.f32 %v823_v55, %v775_v56  ;;  %v467_v8 = vadd.f32 %v827_v57, %v775_v56  ;;  %v1075_v57 = vmov (!%p784_p8), 1.0  }
 0x145   : > { %v824_v60 = vpop.f32.mrb[2].mxu0  ;;  %v828_v61 = vpop.f32.mrb[2].mxu1  ;;  %v443_v62 = vadd.f32 %v775_v56, %v442_v58  ;;  %v459_v5 = vadd.f32 %v775_v56, %v458_v59  ;;  %562 = vst.msk [vmem:[#allocation3] sm:$0x1] (!%p784_p8), %vm560_vm1, %v1075_v57 }
 0x146   : > { %v445_v63 = vpop.f32.mrb[3].mxu0  ;;  %v461_v0 = vpop.f32.mrb[3].mxu1  ;;  %v454_v3 = vadd.f32 %v824_v60, %v775_v56  ;;  %v470_v12 = vadd.f32 %v828_v61, %v775_v56 }
 0x147   : > { %v446_v2 = vadd.f32 %v775_v56, %v445_v63  ;;  %916 = vtanh.f32 %v443_v62  ;;  %v462_v6 = vadd.f32 %v775_v56, %v461_v0 }
 0x148   : > { %918 = vtanh.f32 %v451_v1 }
 0x149   : > { %920 = vtanh.f32 %v446_v2 }
 0x14a   : > { %922 = vtanh.f32 %v454_v3 }
 0x14b   : > { %924 = vtanh.f32 %v459_v5 }
 0x14c   : > { %926 = vtanh.f32 %v462_v6 }
 0x14d   : > { %928 = vtanh.f32 %v467_v8 }
 0x14e   : > { %930 = vtanh.f32 %v470_v12 }
 0x151   : > { %v917_v14 = vpop.eup %916 }
 0x152   : > { %v919_v17 = vpop.eup %918  ;;  %v529_v19 = vmul.f32 %v917_v14, %v492_v4 }
 0x153   : > { %v921_v18 = vpop.eup %920  ;;  %v531_v23 = vmul.f32 %v919_v17, %v502_v7 }
 0x154   : > { %v530_v20 = vmul.f32 %v921_v18, %v497_v13  ;;  %v923_v21 = vpop.eup %922 }
 0x155   : > { %v925_v25 = vpop.eup %924  ;;  %v532_v27 = vmul.f32 %v923_v21, %v507_v15 }
 0x156   : > { %v537_v24 = vadd.f32 %v530_v20, %v529_v19  ;;  %v927_v29 = vpop.eup %926  ;;  %v533_v31 = vmul.f32 %v925_v25, %v512_v22 }
 0x157   : > { %v929_v32 = vpop.eup %928  ;;  %v534_v35 = vmul.f32 %v927_v29, %v517_v26 }
 0x158   : > { %v538_v28 = vadd.f32 %v537_v24, %v531_v23  ;;  %v931_v36 = vpop.eup %930  ;;  %v535_v41 = vmul.f32 %v929_v32, %v522_v33 }
 0x159   : > { %v536_v43 = vmul.f32 %v931_v36, %v527_v37 }
 0x15a   : > { %v539_v30 = vadd.f32 %v538_v28, %v532_v27 }
 0x15c   : > { %v540_v34 = vadd.f32 %v539_v30, %v533_v31 }
 0x15e   : > { %v541_v40 = vadd.f32 %v540_v34, %v534_v35 }
 0x160   : > { %v542_v42 = vadd.f32 %v541_v40, %v535_v41 }
 0x162   : > { %v543_v44 = vadd.f32 %v542_v42, %v536_v43 }
 0x164   : > { %v544_v47 = vrot.slane %v543_v44, 4 }
 0x166   : > { %v545_v48 = vadd.f32 %v544_v47, %v543_v44 }
 0x168   : > { %v546_v49 = vrot.slane %v545_v48, 2 }
 0x16a   : > { %v547_v50 = vadd.f32 %v546_v49, %v545_v48 }
 0x16c   : > { %v548_v51 = vrot.slane %v547_v50, 1 }
 0x16e   : > { %v549_v53 = vadd.f32 %v548_v51, %v547_v50 }
 0x170   : > { %v551_v54 = vmul.f32 %v550_v52, %v549_v53 }
 0x172   : > { %v553_v55 = vsel %vm552_vm0, %v551_v54, 0.0 }
 0x173   : > { %554 = vadd.xlane.f32.xlu0 %v553_v55 }
 0x1fa   : > { %559 = sbr.rel (%p784_p8) target bundleno = 514 (0x202), region = 56 }
 0x200   : > { %v555_v56 = vpop.xlane.xlu0 %554 }
 0x201   : > { %561 = vst.msk [vmem:[#allocation2] sm:$0x1] %vm560_vm1, %v555_v56 }
 0x202 PF: > { %p785_p11 = scmp.le.s32.totalorder %s1135_s25, 0 }
 0x203   : > { %vm586_vm2 = vcmask (!%p785_p11), 0   ;;  %v1076_v59 = vmov (!%p785_p11), 0   ;;  %v597_v1 = vlaneseq (!%p785_p11)  ;;  %v583_v4 = vld [vmem:[#allocation3] sm:$0x1] (!%p785_p11)  ;;  %v588_v14 = vld [vmem:[#allocation9] sm:$0xff] (!%p785_p11)  ;;  %v589_v15 = vld [vmem:[#allocation9 + $0x8] sm:$0xff] (!%p785_p11) }
 0x204   : > { %574 = sbr.rel (%p785_p11) target bundleno = 676 (0x2a4), region = 60  ;;  %932 = vset.pattern.permute.xlu0 (!%p785_p11), %v1076_v59  ;;  %v590_v17 = vld [vmem:[#allocation9 + $0x10] sm:$0xff] (!%p785_p11)  ;;  %v591_v18 = vld [vmem:[#allocation9 + $0x18] sm:$0xff] (!%p785_p11)  ;;  %v592_v19 = vld [vmem:[#allocation9 + $0x20] sm:$0xff] (!%p785_p11) }
 0x205   : > { %v598_v2 = vshrl.u32 (!%p785_p11), %v597_v1, 7  ;;  %v593_v24 = vld [vmem:[#allocation9 + $0x28] sm:$0xff] (!%p785_p11)  ;;  %v594_v25 = vld [vmem:[#allocation9 + $0x30] sm:$0xff] (!%p785_p11)  ;;  %v595_v26 = vld [vmem:[#allocation9 + $0x38] sm:$0xff] (!%p785_p11) }
 0x207   : > { %v599_v3 = vsub.s32 (!%p785_p11), 0, %v598_v2 }
 0x208   : > { %v575_v58 = vld [vmem:[#allocation2] sm:$0x1] (!%p785_p11) }
 0x209   : > { %v576_v60 = vmax.f32 (!%p785_p11), %v575_v58, %v555_v56 }
 0x20b   : > { %v577_v61 = vsub.f32 %v575_v58, %v576_v60  ;;  %641 = vst.msk [vmem:[#allocation2] sm:$0x1] %vm586_vm2, %v576_v60  ;;  %v580_v62 = vsub.f32 %v555_v56, %v576_v60 }
 0x20d   : > { %v578_v63 = vmul.f32 1.442695, %v577_v61  ;;  %v581_v0 = vmul.f32 1.442695, %v580_v62 }
 0x20f   : > { %933 = vpow2.f32 %v578_v63 }
 0x210   : > { %935 = vpow2.f32 %v581_v0 }
 0x219   : > { %v934_v5 = vpop.eup %933 }
 0x21a   : > { %v936_v6 = vpop.eup %935  ;;  %v600_v7 = vrot.slane %v934_v5, %v599_v3  ;;  %v584_v8 = vmul.f32 %v934_v5, %v583_v4 }
 0x21b   : > { %845 = vpush %v936_v6 }
 0x21c   : > { %602 = vperm.xlu0 %932, %v600_v7   ;;  %v585_v12 = vadd.f32 %v936_v6, %v584_v8 }
 0x21e   : > { %587 = vst.msk [vmem:[#allocation3] sm:$0x1] %vm586_vm2, %v585_v12 }
 0x24c   : > { %s846_s10 = spop %845 }
 0x24d   : > { %v615_v13 = vstv %s846_s10 }
 0x24e   : > { %v617_v20 = vmul.f32 %v615_v13, %v1275_v9  ;;  %v618_v21 = vmul.f32 %v615_v13, %v1278_v10  ;;  %v619_v22 = vmul.f32 %v615_v13, %v1318_v38  ;;  %v620_v23 = vmul.f32 %v615_v13, %v1321_v39 }
 0x24f   : > { %v621_v27 = vmul.f32 %v615_v13, %v1281_v11  ;;  %v622_v28 = vmul.f32 %v615_v13, %v1284_v16  ;;  %v623_v29 = vmul.f32 %v615_v13, %v1327_v45  ;;  %v624_v30 = vmul.f32 %v615_v13, %v1330_v46 }
 0x29b   : > { %v603_v31 = vpop.permute.xlu0 %602 }
 0x29c   : > { %v605_v32 = vmul.f32 %v603_v31, %v588_v14  ;;  %v606_v9 = vmul.f32 %v603_v31, %v589_v15  ;;  %v607_v33 = vmul.f32 %v603_v31, %v590_v17  ;;  %v608_v10 = vmul.f32 %v603_v31, %v591_v18 }
 0x29d   : > { %v609_v34 = vmul.f32 %v603_v31, %v592_v19  ;;  %v610_v38 = vmul.f32 %v603_v31, %v593_v24  ;;  %v611_v35 = vmul.f32 %v603_v31, %v594_v25  ;;  %v612_v39 = vmul.f32 %v603_v31, %v595_v26 }
 0x29e   : > { %v625_v36 = vadd.f32 %v617_v20, %v605_v32  ;;  %v626_v37 = vadd.f32 %v618_v21, %v606_v9  ;;  %v627_v40 = vadd.f32 %v619_v22, %v607_v33  ;;  %v628_v41 = vadd.f32 %v620_v23, %v608_v10 }
 0x29f   : > { %v629_v11 = vadd.f32 %v621_v27, %v609_v34  ;;  %v630_v42 = vadd.f32 %v622_v28, %v610_v38  ;;  %v631_v16 = vadd.f32 %v623_v29, %v611_v35  ;;  %v632_v43 = vadd.f32 %v624_v30, %v612_v39 }
 0x2a0   : > { %633 = vst [vmem:[#allocation9] sm:$0xff] %v625_v36  ;;  %634 = vst [vmem:[#allocation9 + $0x8] sm:$0xff] %v626_v37 }
 0x2a1   : > { %635 = vst [vmem:[#allocation9 + $0x10] sm:$0xff] %v627_v40  ;;  %636 = vst [vmem:[#allocation9 + $0x18] sm:$0xff] %v628_v41 }
 0x2a2   : > { %637 = vst [vmem:[#allocation9 + $0x20] sm:$0xff] %v629_v11  ;;  %638 = vst [vmem:[#allocation9 + $0x28] sm:$0xff] %v630_v42 }
 0x2a3   : > { %639 = vst [vmem:[#allocation9 + $0x30] sm:$0xff] %v631_v16  ;;  %640 = vst [vmem:[#allocation9 + $0x38] sm:$0xff] %v632_v43 }
 0x2a4 PF: > { %p786_p3 = scmp.ne.s32.totalorder %s1135_s25, 2 }
 0x2a5   : > { %v654_v45 = vld [vmem:[#allocation3] sm:$0x1] (!%p786_p3)  ;;  %v657_v46 = vlaneseq (!%p786_p3)  ;;  %v1077_v44 = vmov (!%p786_p3), 0  }
 0x2a6   : > { %645 = sbr.rel (%p786_p3) target bundleno = 825 (0x339), region = 64  ;;  %937 = vset.pattern.permute.xlu0 (!%p786_p3), %v1077_v44  ;;  %938 = vrcp.f32 (!%p786_p3), %v654_v45 }
 0x2a7   : > { %v658_v47 = vshrl.u32 (!%p786_p3), %v657_v46, 7  ;;  %v646_v51 = vld [vmem:[#allocation9] sm:$0xff] (!%p786_p3)  ;;  %v647_v52 = vld [vmem:[#allocation9 + $0x8] sm:$0xff] (!%p786_p3) }
 0x2a8   : > { %v648_v53 = vld [vmem:[#allocation9 + $0x10] sm:$0xff] (!%p786_p3)  ;;  %v649_v54 = vld [vmem:[#allocation9 + $0x18] sm:$0xff] (!%p786_p3) }
 0x2a9   : > { %v659_v48 = vsub.s32 (!%p786_p3), 0, %v658_v47  ;;  %v650_v55 = vld [vmem:[#allocation9 + $0x20] sm:$0xff] (!%p786_p3)  ;;  %v651_v56 = vld [vmem:[#allocation9 + $0x28] sm:$0xff] (!%p786_p3) }
 0x2aa   : > { %v652_v57 = vld [vmem:[#allocation9 + $0x30] sm:$0xff] (!%p786_p3)  ;;  %v653_v58 = vld [vmem:[#allocation9 + $0x38] sm:$0xff] (!%p786_p3) }
 0x2b0   : > { %v939_v49 = vpop.eup %938 }
 0x2b1   : > { %v660_v50 = vrot.slane %v939_v49, %v659_v48 }
 0x2b3   : > { %662 = vperm.xlu0 %937, %v660_v50  }
 0x332   : > { %v663_v59 = vpop.permute.xlu0 %662 }
 0x333   : > { %v665_v60 = vmul.f32 %v663_v59, %v646_v51  ;;  %v666_v61 = vmul.f32 %v663_v59, %v647_v52  ;;  %v667_v62 = vmul.f32 %v663_v59, %v648_v53  ;;  %v668_v63 = vmul.f32 %v663_v59, %v649_v54 }
 0x334   : > { %v669_v0 = vmul.f32 %v663_v59, %v650_v55  ;;  %v670_v1 = vmul.f32 %v663_v59, %v651_v56  ;;  %v671_v2 = vmul.f32 %v663_v59, %v652_v57  ;;  %v672_v3 = vmul.f32 %v663_v59, %v653_v58 }
 0x335   : > { %673 = vst [vmem:[#allocation9] sm:$0xff] %v665_v60  ;;  %674 = vst [vmem:[#allocation9 + $0x8] sm:$0xff] %v666_v61 }
 0x336   : > { %675 = vst [vmem:[#allocation9 + $0x10] sm:$0xff] %v667_v62  ;;  %676 = vst [vmem:[#allocation9 + $0x18] sm:$0xff] %v668_v63 }
 0x337   : > { %677 = vst [vmem:[#allocation9 + $0x20] sm:$0xff] %v669_v0  ;;  %678 = vst [vmem:[#allocation9 + $0x28] sm:$0xff] %v670_v1 }
 0x338   : > { %679 = vst [vmem:[#allocation9 + $0x30] sm:$0xff] %v671_v2  ;;  %680 = vst [vmem:[#allocation9 + $0x38] sm:$0xff] %v672_v3 }
 0x339 PF: > { %p863_p6 = scmp.eq.s32.totalorder %s1135_s25, 2  ;;  %s1078_s11 = smov [#allocation9]  }
 0x33a   : > { %s687_s13 = sshll.u32 %s1078_s11, 4  ;;  %s688_s13 = int_to_ptr.vmem [resolvable:$true] %s687_s13 }
 0x33b   : > { %s1000_s19 = scalar_lea.vmem %s688_s13, 1024  ;;  %p1007_p13 = scmp.lt.s32.totalorder %s688_s13, %s688_s13 }
 0x33c   : > { %p1001_p1 = scmp.ne.s32.totalorder %s688_s13, %s1000_s19  ;;  %p1008_p4 = scmp.lt.s32.totalorder %s1000_s19, %s1000_s19 }
 0x33e   : > { %p1002_p2 = pnand %p1001_p1, %p863_p6  ;;  %p1009_p5 = por %p1008_p4, %p1007_p13 }
 0x340   : > { %p1003_p9 = pneg %p1002_p2 }
 0x342   : > { %p1010_p10 = pnand %p1009_p5, %p1003_p9 }
 0x344   : > { %1013 = shalt.err (!%p1010_p10)
}
 0x345   : > { %s1014_s8 = scalar_lea.hbm %s1411_s6, 1024 }
 0x346   : > { %p1015_p12 = scmp.ne.s32.totalorder %s1411_s6, %s1014_s8  ;;  %p1020_p8 = scmp.lt.u32.totalorder %s1014_s8, %s1411_s6 }
 0x348   : > { %p1016_p0 = pnand %p1015_p12, %p863_p6 }
 0x34a   : > { %p1017_p7 = pneg %p1016_p0 }
 0x34c   : > { %p1022_p11 = pnand %p1020_p8, %p1017_p7 }
 0x34e   : > { %1025 = shalt.err (!%p1022_p11)
}
 0x34f   : > { %s1079_s21 = smov 128   ;;  %s1080_s28 = smov 8  }
 0x350   : > { %852 = dma.vmem_to_hbm [thread:$0]  (%p863_p6), %s688_s13, 1024, %s1411_s6, [#allocation6], %s1079_s21, %s1079_s21, %s1080_s28  }
 0x351   : > { %1051 = dma.done.wait (%p863_p6), [#allocation6], 1024  }
 0x352   : > { %1053 = vsyncadd (%p863_p6), [#allocation6], 4294966272 }
 0x353 PF: > { %p20_p3 = scmp.ge.s32.totalorder %s1138_s26, 5   ;;  %s1418_s21 = smov %s1060_s22 }
 0x354   : > { %s1419_s22 = smov %s1064_s23  ;;  %s1420_s23 = smov %s1148_s29 }
 0x355   : > { %s1421_s24 = smov %s1138_s26  ;;  %22 = sbr.rel (!%p20_p3) target bundleno = 6 (0x6), region = 106 }
 0x35c   :  { %703 = vsyncpa [#allocation5], 1 }
 0x35d   :  { %705 = vsyncpa [#allocation5 + $0x1], 1 }
 0x35e   :  { %706 = vsyncpa [#allocation8], 1 }
 0x35f   :  { %708 = vsyncpa [#allocation8 + $0x1], 1 }
 0x360   :  { %709 = vsyncpa [#allocation6], 1 }
 0x361   :  { %711 = vsyncpa [#allocation6 + $0x1], 1 }

</bundles_post_ra>
